<compile_context>
chip_gen: v7x
topology: tpu7x:2x2x1
jax: 0.10.0
libtpu: 0.0.40
codegen_flags: <defaults>
</compile_context>

<pallas_src>
import functools

import jax
import jax.numpy as jnp
from jax import lax
from jax.experimental import pallas as pl
from jax.experimental.pallas import tpu as pltpu


# ---------------------------------------------------------------------------
# Activation (pure jnp; shared by the Pallas kernels and the reference).
# ---------------------------------------------------------------------------
def _apply_act(y, act, negative_slope):
    if act == "lrelu":
        return jnp.where(y >= 0, y, y * negative_slope)
    if act == "relu":
        return jnp.maximum(y, 0.0)
    if act == "sigmoid":
        return jax.nn.sigmoid(y)
    if act == "tanh":
        return jnp.tanh(y)
    if act == "linear":
        return y
    raise ValueError(f"Unsupported activation function: {act}")


# ---------------------------------------------------------------------------
# Pallas kernels
# ---------------------------------------------------------------------------
def _linear_act_kernel(x_ref, w_ref, b_ref, o_ref, *, act, negative_slope):
    """One (TM, K) x (K, N) tile: MXU matmul + bias + activation, fused."""
    y = jnp.dot(x_ref[...], w_ref[...], preferred_element_type=jnp.float32)
    y = y + b_ref[...]
    y = _apply_act(y, act, negative_slope)
    o_ref[...] = y.astype(o_ref.dtype)


def _gumbel_softmax_kernel(p_ref, u_ref, z_ref, *, temperature, epsilon):
    """z = softmax((p + Gumbel(u)) / T, axis=-1) -- the categorical bottleneck."""
    p = p_ref[...].astype(jnp.float32)
    u = u_ref[...].astype(jnp.float32)
    g = -jnp.log(-jnp.log(u + epsilon) + epsilon)
    logits = (p + g) / temperature
    m = jnp.max(logits, axis=-1, keepdims=True)
    e = jnp.exp(logits - m)
    denom = jnp.sum(e, axis=-1, keepdims=True)
    z_ref[...] = (e / denom).astype(z_ref.dtype)


# ---------------------------------------------------------------------------
# Kernel wrappers
# ---------------------------------------------------------------------------
def _round_up(x, m):
    return ((x + m - 1) // m) * m


def pallas_linear_act(x, w, b, act, negative_slope=0.01, *, max_block_rows=256):
    """y = act(x @ w + b) via a row-tiled fused Pallas kernel.

    x: (M, K), w: (K, N), b: (N,).  K and N stay whole (they are small for this
    model); the M (row) axis is tiled and marked "parallel" so the copy/compute
    pipeline overlaps and megacore can shard it when M is large.
    """
    M, K = x.shape
    K2, N = w.shape
    assert K == K2, (K, K2)
    b2 = b.reshape(1, N)

    tm = min(max_block_rows, _round_up(M, 8))
    Mp = _round_up(M, tm)
    if Mp != M:
        x = jnp.pad(x, ((0, Mp - M), (0, 0)))

    kernel = functools.partial(
        _linear_act_kernel, act=act, negative_slope=negative_slope)

    out = pl.pallas_call(
        kernel,
        out_shape=jax.ShapeDtypeStruct((Mp, N), x.dtype),
        grid=(Mp // tm,),
        in_specs=[
            pl.BlockSpec((tm, K), lambda i: (i, 0)),
            pl.BlockSpec((K, N), lambda i: (0, 0)),
            pl.BlockSpec((1, N), lambda i: (0, 0)),
        ],
        out_specs=pl.BlockSpec((tm, N), lambda i: (i, 0)),
        compiler_params=pltpu.CompilerParams(
            dimension_semantics=("parallel",)),
    )(x, w, b2)
    return out[:M] if Mp != M else out


def pallas_gumbel_softmax(p, u, temperature, epsilon=1e-7):
    kernel = functools.partial(
        _gumbel_softmax_kernel, temperature=temperature, epsilon=epsilon)
    return pl.pallas_call(
        kernel,
        out_shape=jax.ShapeDtypeStruct(p.shape, p.dtype),
    )(p, u)


def conv1d_act(x, w, b, stride, act, negative_slope):
    """Conv1d (padding=0) + bias + activation via im2col + Pallas matmul.

    x: (B, C_in, L); w: (C_out, C_in, K) (torch layout); b: (C_out,).
    The im2col gather is metadata/layout plumbing; the GEMM runs in Pallas.
    """
    B, C_in, L = x.shape
    C_out, _, K = w.shape
    L_out = (L - K) // stride + 1
    idx = jnp.arange(L_out)[:, None] * stride + jnp.arange(K)[None, :]  # (L_out, K)
    patches = x[:, :, idx]                                  # (B, C_in, L_out, K)
    patches = patches.transpose(0, 2, 1, 3).reshape(B * L_out, C_in * K)
    w2 = w.reshape(C_out, C_in * K).T                       # (C_in*K, C_out)
    y = pallas_linear_act(patches, w2, b, act, negative_slope)
    return y.reshape(B, L_out, C_out).transpose(0, 2, 1)    # (B, C_out, L_out)


def conv_transpose1d_act(x, w, b, stride, output_padding, act, negative_slope):
    """ConvTranspose1d (padding=0) + bias + activation.

    Lowered to: zero-dilate the input by `stride`, pad, flip/transpose the
    kernel, then run a stride-1 Conv1d via the same im2col + Pallas GEMM.
    x: (B, C_in, L); w: (C_in, C_out, K) (torch layout); b: (C_out,).
    """
    B, C_in, L = x.shape
    _, C_out, K = w.shape
    L_dil = (L - 1) * stride + 1
    x_dil = jnp.zeros((B, C_in, L_dil), x.dtype).at[:, :, ::stride].set(x)
    x_pad = jnp.pad(x_dil, ((0, 0), (0, 0), (K - 1, K - 1 + output_padding)))
    w_conv = jnp.flip(w, axis=-1).transpose(1, 0, 2)        # (C_out, C_in, K)
    return conv1d_act(x_pad, w_conv, b, 1, act, negative_slope)


# ---------------------------------------------------------------------------
# Model
# ---------------------------------------------------------------------------
class ConvolutionalCategoricalAutoencoder:
    def __init__(self, input_channels, hidden_size, hidden_channels, strides,
                 kernel_sizes, latent_dim, decoder_output_padding, conv_output,
                 activation="lrelu", negative_slope=0.01, temperature=0.5,
                 *, key, dtype=jnp.float32):
        self.activation = activation
        self.negative_slope = float(negative_slope)
        self.temperature = float(temperature)
        self.latent_dim = latent_dim
        self.input_channels = input_channels
        self.hidden_channels = list(hidden_channels)
        self.strides = list(strides)
        self.kernel_sizes = list(kernel_sizes)
        self.rev_hidden_channels = list(reversed(hidden_channels))
        self.rev_strides = list(reversed(strides))
        self.rev_kernel_sizes = list(reversed(kernel_sizes))
        self.out_pads = list(decoder_output_padding)

        def uinit(k, shape, fan_in):
            bound = 1.0 / (fan_in ** 0.5)
            return jax.random.uniform(k, shape, dtype=dtype,
                                      minval=-bound, maxval=bound)

        keys = iter(jax.random.split(key, 64))

        # Encoder convs (torch weight layout: (C_out, C_in, K)).
        self.enc_convs = []
        prev = input_channels
        for c, ksz in zip(self.hidden_channels, self.kernel_sizes):
            w = uinit(next(keys), (c, prev, ksz), prev * ksz)
            b = uinit(next(keys), (c,), prev * ksz)
            self.enc_convs.append((w, b))
            prev = c

        # Encoder dense head (weights stored as (in, out)).
        self.enc_fc1_w = uinit(next(keys), (conv_output, hidden_size), conv_output)
        self.enc_fc1_b = uinit(next(keys), (hidden_size,), conv_output)
        self.enc_fc2_w = uinit(next(keys), (hidden_size, latent_dim), hidden_size)
        self.enc_fc2_b = uinit(next(keys), (latent_dim,), hidden_size)

        # Decoder dense head.
        self.dec_fc1_w = uinit(next(keys), (latent_dim, hidden_size), latent_dim)
        self.dec_fc1_b = uinit(next(keys), (hidden_size,), latent_dim)
        self.dec_fc2_w = uinit(next(keys), (hidden_size, conv_output), hidden_size)
        self.dec_fc2_b = uinit(next(keys), (conv_output,), hidden_size)

        # Decoder transposed convs (torch weight layout: (C_in, C_out, K)).
        in_chs = self.rev_hidden_channels
        out_chs = self.rev_hidden_channels[1:] + [input_channels]
        self.dec_convts = []
        for cin, cout, ksz in zip(in_chs, out_chs, self.rev_kernel_sizes):
            w = uinit(next(keys), (cin, cout, ksz), cin * ksz)
            b = uinit(next(keys), (cout,), cin * ksz)
            self.dec_convts.append((w, b))

    # -- forward pieces ----------------------------------------------------
    def encode(self, x):
        # x.unsqueeze(1): pure metadata -- no kernel, no HBM copy (perf fix).
        h = x[:, None, :]
        for (w, b), s in zip(self.enc_convs, self.strides):
            h = conv1d_act(h, w, b, s, self.activation, self.negative_slope)
        h = h.reshape(h.shape[0], -1)                       # Flatten
        h = pallas_linear_act(h, self.enc_fc1_w, self.enc_fc1_b,
                              self.activation, self.negative_slope)
        p = pallas_linear_act(h, self.enc_fc2_w, self.enc_fc2_b, "linear", 0.0)
        return p

    def reparameterize(self, p, noise_key, temperature=None, epsilon=1e-7):
        t = self.temperature if temperature is None else temperature
        # TODO(synk): torch.rand_like noise is generated with jax.random here
        # for deterministic testing; could instead use pltpu.prng_seed /
        # pltpu.prng_random_bits inside the kernel.
        u = jax.random.uniform(noise_key, p.shape, dtype=p.dtype)
        return pallas_gumbel_softmax(p, u, t, epsilon)

    def decode(self, z):
        h = pallas_linear_act(z, self.dec_fc1_w, self.dec_fc1_b,
                              self.activation, self.negative_slope)
        h = pallas_linear_act(h, self.dec_fc2_w, self.dec_fc2_b,
                              self.activation, self.negative_slope)
        h = h.reshape(h.shape[0], self.rev_hidden_channels[0], -1)  # Unflatten
        n = len(self.dec_convts)
        for i, ((w, b), s, op) in enumerate(
                zip(self.dec_convts, self.rev_strides, self.out_pads)):
            act = self.activation if i < n - 1 else "linear"
            h = conv_transpose1d_act(h, w, b, s, op, act, self.negative_slope)
        return jnp.squeeze(h)   # matches torch .squeeze()

    def __call__(self, x, noise_key):
        p = self.encode(x)
        z = self.reparameterize(p, noise_key, self.temperature)
        x_hat = self.decode(z)
        return x_hat, p


# ---------------------------------------------------------------------------
# Pure-JAX reference (XLA convs / HIGHEST-precision matmuls) for checking.
# ---------------------------------------------------------------------------
def reference_forward(model, x, noise_key):
    act, ns = model.activation, model.negative_slope
    HI = lax.Precision.HIGHEST
    h = x[:, None, :]
    for (w, b), s in zip(model.enc_convs, model.strides):
        h = lax.conv_general_dilated(
            h, w, (s,), "VALID",
            dimension_numbers=("NCH", "OIH", "NCH"), precision=HI)
        h = _apply_act(h + b[None, :, None], act, ns)
    h = h.reshape(h.shape[0], -1)
    h = _apply_act(jnp.dot(h, model.enc_fc1_w, precision=HI) + model.enc_fc1_b, act, ns)
    p = jnp.dot(h, model.enc_fc2_w, precision=HI) + model.enc_fc2_b
    u = jax.random.uniform(noise_key, p.shape, dtype=p.dtype)
    g = -jnp.log(-jnp.log(u + 1e-7) + 1e-7)
    z = jax.nn.softmax((p + g) / model.temperature, axis=-1)
    h = _apply_act(jnp.dot(z, model.dec_fc1_w, precision=HI) + model.dec_fc1_b, act, ns)
    h = _apply_act(jnp.dot(h, model.dec_fc2_w, precision=HI) + model.dec_fc2_b, act, ns)
    h = h.reshape(h.shape[0], model.rev_hidden_channels[0], -1)
    n = len(model.dec_convts)
    for i, ((w, b), s, op) in enumerate(
            zip(model.dec_convts, model.rev_strides, model.out_pads)):
        K = w.shape[-1]
        w_conv = jnp.flip(w, axis=-1).transpose(1, 0, 2)
        h = lax.conv_general_dilated(
            h, w_conv, (1,), [(K - 1, K - 1 + op)], lhs_dilation=(s,),
            dimension_numbers=("NCH", "OIH", "NCH"), precision=HI)
        h = h + b[None, :, None]
        if i < n - 1:
            h = _apply_act(h, act, ns)
    return jnp.squeeze(h), p


if __name__ == "__main__":
    root = jax.random.PRNGKey(0)
    k_param, k_x, k_noise = jax.random.split(root, 3)

    # Small shapes consistent with the module's forward.
    B, L = 2, 32
    input_channels = 1
    hidden_channels = [4, 8]
    strides = [2, 2]
    kernel_sizes = [3, 3]
    hidden_size = 32
    latent_dim = 8
    decoder_output_padding = [0, 1]
    # L=32 -(k3,s2)-> 15 -(k3,s2)-> 7 ; Flatten: 8 * 7 = 56
    conv_output = 8 * 7

    model = ConvolutionalCategoricalAutoencoder(
        input_channels, hidden_size, hidden_channels, strides, kernel_sizes,
        latent_dim, decoder_output_padding, conv_output,
        activation="lrelu", negative_slope=0.01, temperature=0.5, key=k_param)

    x = jax.random.normal(k_x, (B, L), dtype=jnp.float32)

    x_hat, p = model(x, noise_key=k_noise)
    jax.block_until_ready(x_hat)
    jax.block_until_ready(p)

    # Check against the pure-JAX reference (same params, same noise).
    x_hat_ref, p_ref = reference_forward(model, x, k_noise)
    jax.block_until_ready(x_hat_ref)

    assert p.shape == (B, latent_dim), p.shape
    assert x_hat.shape == (B, L), x_hat.shape
    assert bool(jnp.all(jnp.isfinite(p))) and bool(jnp.all(jnp.isfinite(x_hat)))
    p_err = float(jnp.max(jnp.abs(p - p_ref)))
    x_err = float(jnp.max(jnp.abs(x_hat - x_hat_ref)))
    assert p_err < 1e-2, p_err
    assert x_err < 1e-2, x_err

    print("KERNEL_OK")
</pallas_src>

<mosaic_0001>
module attributes {stable_mosaic.version = 11 : i64} {
  func.func @_linear_act_kernel(%arg0: i32, %arg1: memref<32x3xf32, #tpu.memory_space<vmem>>, %arg2: memref<3x4xf32, #tpu.memory_space<vmem>>, %arg3: memref<1x4xf32, #tpu.memory_space<vmem>>, %arg4: memref<32x4xf32, #tpu.memory_space<vmem>>) attributes {dimension_semantics = [#tpu.dimension_semantics<parallel>], iteration_bounds = array<i64: 1>, scalar_prefetch = 0 : i64, scratch_operands = 0 : i64, tpu.core_type = #tpu.core_type<tc>, window_params = [{transform_indices = @transform_0, window_bounds = array<i64: 32, 3>}, {pipeline_mode = #tpu.pipeline_mode<synchronous>, transform_indices = @transform_1, window_bounds = array<i64: 3, 4>}, {pipeline_mode = #tpu.pipeline_mode<synchronous>, transform_indices = @transform_2, window_bounds = array<i64: 1, 4>}, {transform_indices = @transform_3, window_bounds = array<i64: 32, 4>}]} {
    %c0 = arith.constant 0 : index
    %c0_0 = arith.constant 0 : index
    %0 = vector.load %arg1[%c0, %c0_0] : memref<32x3xf32, #tpu.memory_space<vmem>>, vector<32x3xf32>
    %c0_1 = arith.constant 0 : index
    %c0_2 = arith.constant 0 : index
    %1 = vector.load %arg2[%c0_1, %c0_2] : memref<3x4xf32, #tpu.memory_space<vmem>>, vector<3x4xf32>
    %cst = arith.constant dense<0.000000e+00> : vector<32x4xf32>
    %2 = tpu.matmul %0, %1, %cst {dimension_numbers = #tpu.dot_dimension_numbers<[1], [0], [0], [1], [0, 0, 1, 1], [], []>} : vector<32x3xf32>, vector<3x4xf32>, vector<32x4xf32> -> vector<32x4xf32>
    %c0_3 = arith.constant 0 : index
    %c0_4 = arith.constant 0 : index
    %3 = vector.load %arg3[%c0_3, %c0_4] : memref<1x4xf32, #tpu.memory_space<vmem>>, vector<1x4xf32>
    %4 = vector.broadcast %3 : vector<1x4xf32> to vector<32x4xf32>
    %5 = arith.addf %2, %4 : vector<32x4xf32>
    %cst_5 = arith.constant 0.000000e+00 : f32
    %6 = vector.broadcast %cst_5 : f32 to vector<32x4xf32>
    %7 = arith.cmpf oge, %5, %6 : vector<32x4xf32>
    %cst_6 = arith.constant 0.00999999977 : f32
    %8 = vector.broadcast %cst_6 : f32 to vector<32x4xf32>
    %9 = arith.mulf %5, %8 : vector<32x4xf32>
    %10 = arith.select %7, %5, %9 : vector<32x4xi1>, vector<32x4xf32>
    %c0_7 = arith.constant 0 : index
    %c0_8 = arith.constant 0 : index
    %11 = vector.load %arg4[%c0_7, %c0_8] : memref<32x4xf32, #tpu.memory_space<vmem>>, vector<32x4xf32>
    tpu.vector_store %arg4[%c0_7, %c0_8], %10 {strides = array<i32>} : memref<32x4xf32, #tpu.memory_space<vmem>>, vector<32x4xf32>,
    return
  }
  func.func @transform_0(%arg0: i32) -> (i32, i32) {
    %c0_i32 = arith.constant 0 : i32
    %c0_i32_0 = arith.constant 0 : i32
    return %arg0, %c0_i32 : i32, i32
  }
  func.func @transform_1(%arg0: i32) -> (i32, i32) {
    %c0_i32 = arith.constant 0 : i32
    %c0_i32_0 = arith.constant 0 : i32
    %c0_i32_1 = arith.constant 0 : i32
    return %c0_i32, %c0_i32_0 : i32, i32
  }
  func.func @transform_2(%arg0: i32) -> (i32, i32) {
    %c0_i32 = arith.constant 0 : i32
    %c0_i32_0 = arith.constant 0 : i32
    %c0_i32_1 = arith.constant 0 : i32
    return %c0_i32, %c0_i32_0 : i32, i32
  }
  func.func @transform_3(%arg0: i32) -> (i32, i32) {
    %c0_i32 = arith.constant 0 : i32
    %c0_i32_0 = arith.constant 0 : i32
    return %arg0, %c0_i32 : i32, i32
  }
}

</mosaic_0001>

<bundles_post_ra>
// kernel: tpu_custom_call.1
= control target key start
LH: loop header
LB: loop body
LE: loop exit
PB: predicated region body
PF: predicated region fallthrough
CT: control target
= control target key end

     0   :  { %vm39_vm0 = vcmask 1042432   ;;  %vm26_vm1 = vcmask 23552   ;;  %vm140_vm2 = vcmask 31744   ;;  %s224_s1 = inlined_call_operand.vmem [shape: f32[3,4], index: 1, kind: input, shape index: {}]   ;;  %s225_s0 = inlined_call_operand.vmem [shape: f32[32,3], index: 0, kind: input, shape index: {}]   ;;  %s226_s2 = inlined_call_operand.vmem [shape: f32[1,4], index: 2, kind: input, shape index: {}]   ;;  %s227_s3 = inlined_call_operand.vmem [shape: f32[32,4], index: 3, kind: output, shape index: {}]  }
   0x1   :  { %v18_v0 = vld [vmem:[%s224_s1] sm:$0x7]  ;;  %v16_v2 = vld [vmem:[%s225_s0 + $0x10] sm:$0xff]  ;;  %v15_v3 = vld [vmem:[%s225_s0 + $0x8] sm:$0xff] }
   0x2   :  { %v14_v1 = vld [vmem:[%s225_s0] sm:$0xff]  ;;  %160 = vmatprep.subr.msk.mxu0 %vm39_vm0, %v18_v0  ;;  %168 = vmatprep.subr.msk.mxu1 %vm39_vm0, %v18_v0  ;;  %v17_v4 = vld [vmem:[%s225_s0 + $0x18] sm:$0xff] }
   0x3   :  { %161 = vmatpush3.msk.msra.mxu0 %vm39_vm0, %v18_v0  ;;  %169 = vmatpush3.msk.msra.mxu1 %vm39_vm0, %v18_v0  ;;  %v149_v5 = vld [vmem:[%s226_s2] ss:$0 sm:$0xff] }
   0x4   :  { %162 = vmatprep.mubr.msk.f32.mxu0 %vm26_vm1, %v14_v1  ;;  %165 = vmatprep.mubr.msk.f32.mxu1 %vm26_vm1, %v16_v2 }
   0x5   :  { %163 = vmatmul.mubr.msk.f32.vlgmr.msra.gmra.mrb[0].mxu0 %vm26_vm1, %v15_v3  ;;  %166 = vmatmul.mubr.msk.f32.vlgmr.msra.gmra.mrb[0].mxu1 %vm26_vm1, %v17_v4 }
  0xd8   :  { %v164_v6 = vpop.f32.mrb[0].mxu0  ;;  %v167_v7 = vpop.f32.mrb[0].mxu1 }
  0xd9   :  { %v115_v8 = vadd.f32 %v164_v6, %v149_v5  ;;  %v125_v9 = vadd.f32 %v167_v7, %v149_v5  ;;  %v109_v10 = vpop.f32.mrb[1].mxu0  ;;  %v119_v11 = vpop.f32.mrb[1].mxu1 }
  0xda   :  { %v110_v12 = vadd.f32 %v149_v5, %v109_v10  ;;  %v120_v13 = vadd.f32 %v149_v5, %v119_v11 }
  0xdb   :  { %vm129_vm3 = vcmp.ge.f32.partialorder %v115_v8, 0.0  ;;  %v133_v14 = vmul.f32 0.01, %v115_v8  ;;  %vm131_vm4 = vcmp.ge.f32.partialorder %v125_v9, 0.0  ;;  %v135_v15 = vmul.f32 0.01, %v125_v9 }
  0xdc   :  { %vm128_vm5 = vcmp.ge.f32.partialorder %v110_v12, 0.0  ;;  %v132_v16 = vmul.f32 0.01, %v110_v12  ;;  %vm130_vm6 = vcmp.ge.f32.partialorder %v120_v13, 0.0  ;;  %v134_v17 = vmul.f32 0.01, %v120_v13 }
  0xdd   :  { %v137_v18 = vsel %vm129_vm3, %v115_v8, %v133_v14  ;;  %v139_v19 = vsel %vm131_vm4, %v125_v9, %v135_v15 }
  0xde   :  { %142 = vst.msk [vmem:[%s227_s3 + $0x8] sm:$0xff] %vm140_vm2, %v137_v18  ;;  %144 = vst.msk [vmem:[%s227_s3 + $0x18] sm:$0xff] %vm140_vm2, %v139_v19  ;;  %v136_v20 = vsel %vm128_vm5, %v110_v12, %v132_v16  ;;  %v138_v21 = vsel %vm130_vm6, %v120_v13, %v134_v17 }
  0xdf   :  { %141 = vst.msk [vmem:[%s227_s3] sm:$0xff] %vm140_vm2, %v136_v20  ;;  %143 = vst.msk [vmem:[%s227_s3 + $0x10] sm:$0xff] %vm140_vm2, %v138_v21 }

</bundles_post_ra>
